<compile_context>
chip_gen: v7x
topology: tpu7x:2x2x1
jax: 0.10.0
libtpu: 0.0.40
codegen_flags: <defaults>
</compile_context>

<pallas_src>
import functools

import jax
import jax.numpy as jnp
from jax.experimental import pallas as pl
from jax.experimental.pallas import tpu as pltpu


def _round_up(x, m):
    return ((x + m - 1) // m) * m


def _contrastive_kernel(o1_ref, o2_ref, tgt_ref, out_ref, *,
                        margin, eps, valid_rows, group, dim):
    tile_r = o1_ref.shape[0]

    # One native-dtype subtract + a single upcast (exact for f32 inputs; for
    # bf16/f16 it matches PyTorch, which also subtracts in the input dtype,
    # and keeps v7x off the VALU-slot limit).
    diff = (o2_ref[...] - o1_ref[...]).astype(jnp.float32)     # (tile_r, group*dim)
    sq = diff * diff

    # Per-row squared distances, exact f32. With packing (group > 1) each
    # kernel row holds `group` original rows side by side along the lane axis,
    # so reduce each dim-wide lane segment separately (XLU work; VALU/MXU free).
    parts = []
    for r in range(group):
        seg = sq[:, r * dim:(r + 1) * dim]
        parts.append(jnp.sum(seg, axis=1, keepdims=True))       # (tile_r, 1)
    distances = parts[0] if group == 1 else jnp.concatenate(parts, axis=1)

    t = tgt_ref[...]                                            # (tile_r, group) f32
    hinge = jnp.maximum(margin - jnp.sqrt(distances + eps), 0.0)
    loss = 0.5 * (t * distances + (1.0 - t) * hinge * hinge)

    # Mask rows past the real batch: the ragged last tile reads undefined data,
    # which stays confined to its own rows and is zeroed here (jnp.where, not a
    # multiply, so NaN/Inf garbage cannot leak into the sum).
    row = (jax.lax.broadcasted_iota(jnp.int32, (tile_r, group), 0)
           + pl.program_id(0) * tile_r)
    loss = jnp.where(row < valid_rows, loss, 0.0)

    # Per-tile partial sum, broadcast over a lane-dense (8, 128) output block.
    out_ref[...] = jnp.broadcast_to(jnp.sum(loss, keepdims=True), out_ref.shape)


def contrastive_loss(output1, output2, target, *, margin, eps=1e-9,
                     size_average=True):
    """output1/output2: (B, D); target: (B,) in {0,1}. Returns a scalar."""
    B, D = output1.shape
    itemsize = jnp.dtype(output1.dtype).itemsize

    # --- Small-D packing (free row-major reshape; never pads / copies). -----
    group = 1
    if D < 128:
        g = max(1, min(16, 128 // D))
        while g > 1 and B % g:
            g -= 1
        group = g
    Bp, Dp = B // group, D * group

    o1 = output1.reshape(Bp, Dp)
    o2 = output2.reshape(Bp, Dp)
    tgt = target.astype(jnp.float32).reshape(Bp, group)

    # --- Tile sizing: ~2 MiB input blocks, generation-aware VMEM budget. ----
    try:
        vmem_cap = int(getattr(pltpu.get_tpu_info(), "vmem_capacity_bytes",
                               64 * 1024 * 1024))
    except Exception:
        vmem_cap = 64 * 1024 * 1024            # conservative (v7x physical)
    vmem_budget = min(vmem_cap // 2, 48 * 1024 * 1024)

    row_in = Dp * itemsize                      # one input row, native dtype
    row_f32 = Dp * 4                            # one f32 temporary row
    # 2 inputs x 2 pipeline buffers + ~4 live f32 temporaries per row.
    per_row_vmem = 2 * 2 * row_in + 4 * row_f32
    rows_vmem = max(8, (vmem_budget // per_row_vmem) // 8 * 8)
    rows_dma = max(8, _round_up(pl.cdiv(2 * 1024 * 1024, row_in), 8))
    tile_r = min(rows_vmem, rows_dma, 8192, _round_up(Bp, 8))

    # v7x megacore: keep >= 2 (ideally 4) grid steps so both TensorCores work.
    if Bp >= 16:
        want = 4 if Bp >= 32 else 2
        tile_r = min(tile_r, max(8, _round_up(pl.cdiv(Bp, want), 8)))

    num_tiles = pl.cdiv(Bp, tile_r)
    # TODO(synk): for extremely large D (a single 8-row block exceeding the
    # VMEM budget) add a D-blocked "arbitrary" reduction axis with a scratch
    # accumulator; not needed for typical embedding widths.

    est_vmem = tile_r * per_row_vmem + (1 << 20)
    vmem_limit = int(min(vmem_cap * 9 // 10,
                         max(32 * 1024 * 1024, 2 * est_vmem)))

    kernel = functools.partial(
        _contrastive_kernel, margin=float(margin), eps=float(eps),
        valid_rows=Bp, group=group, dim=D)

    partials = pl.pallas_call(
        kernel,
        out_shape=jax.ShapeDtypeStruct((num_tiles * 8, 128), jnp.float32),
        grid=(num_tiles,),
        in_specs=[
            pl.BlockSpec((tile_r, Dp), lambda i: (i, 0)),
            pl.BlockSpec((tile_r, Dp), lambda i: (i, 0)),
            pl.BlockSpec((tile_r, group), lambda i: (i, 0)),
        ],
        out_specs=pl.BlockSpec((8, 128), lambda i: (i, 0)),
        compiler_params=pltpu.CompilerParams(
            dimension_semantics=("parallel",),
            vmem_limit_bytes=vmem_limit),
    )(o1, o2, tgt)

    total = jnp.sum(partials[::8, 0])           # one scalar per grid step
    return total / B if size_average else total


def _reference(output1, output2, target, margin, eps=1e-9, size_average=True):
    distances = jnp.sum(
        (output2.astype(jnp.float32) - output1.astype(jnp.float32)) ** 2,
        axis=1)
    t = target.astype(jnp.float32)
    hinge = jnp.maximum(margin - jnp.sqrt(distances + eps), 0.0)
    losses = 0.5 * (t * distances + (1.0 - t) * hinge ** 2)
    return jnp.mean(losses) if size_average else jnp.sum(losses)


if __name__ == "__main__":
    key = jax.random.PRNGKey(0)
    margin = 1.0
    ks = jax.random.split(key, 9)

    # Case 1: small batch, D < 128 (packed path, single ragged tile), mean.
    # Inputs scaled down so both the "same" and hinge branches are non-zero.
    B, D = 8, 32
    o1 = 0.1 * jax.random.normal(ks[0], (B, D), dtype=jnp.float32)
    o2 = 0.1 * jax.random.normal(ks[1], (B, D), dtype=jnp.float32)
    tg = jax.random.bernoulli(ks[2], 0.5, (B,)).astype(jnp.int32)
    got = jax.block_until_ready(contrastive_loss(o1, o2, tg, margin=margin))
    ref = _reference(o1, o2, tg, margin)
    assert jnp.allclose(got, ref, atol=1e-5, rtol=1e-4), (got, ref)

    # Case 2: batch not divisible by the tile or the full packing group
    # (exercises the in-kernel row mask; no padding anywhere), sum reduction.
    B2, D2 = 10, 32
    o1b = 0.1 * jax.random.normal(ks[3], (B2, D2), dtype=jnp.float32)
    o2b = 0.1 * jax.random.normal(ks[4], (B2, D2), dtype=jnp.float32)
    tgb = jax.random.bernoulli(ks[5], 0.5, (B2,)).astype(jnp.int32)
    got2 = jax.block_until_ready(
        contrastive_loss(o1b, o2b, tgb, margin=margin, size_average=False))
    ref2 = _reference(o1b, o2b, tgb, margin, size_average=False)
    assert jnp.allclose(got2, ref2, atol=1e-5, rtol=1e-4), (got2, ref2)

    # Case 3: bf16 inputs, several grid steps (megacore split) + packing.
    B3, D3 = 512, 64
    o1c = jax.random.normal(ks[6], (B3, D3), dtype=jnp.bfloat16)
    o2c = jax.random.normal(ks[7], (B3, D3), dtype=jnp.bfloat16)
    tgc = jax.random.bernoulli(ks[8], 0.5, (B3,)).astype(jnp.int32)
    got3 = jax.block_until_ready(contrastive_loss(o1c, o2c, tgc, margin=margin))
    ref3 = _reference(o1c, o2c, tgc, margin)
    # bf16 path subtracts in bf16 (as the PyTorch module would); small tol.
    assert jnp.allclose(got3, ref3, atol=2e-2, rtol=2e-2), (got3, ref3)

    print("KERNEL_OK")
</pallas_src>

<mosaic_0001>
module attributes {stable_mosaic.version = 11 : i64} {
  func.func @_contrastive_kernel(%arg0: i32, %arg1: memref<8x128xf32, #tpu.memory_space<vmem>>, %arg2: memref<8x128xf32, #tpu.memory_space<vmem>>, %arg3: memref<8x4xf32, #tpu.memory_space<vmem>>, %arg4: memref<8x128xf32, #tpu.memory_space<vmem>>) attributes {dimension_semantics = [#tpu.dimension_semantics<parallel>], iteration_bounds = array<i64: 1>, scalar_prefetch = 0 : i64, scratch_operands = 0 : i64, tpu.core_type = #tpu.core_type<tc>, window_params = [{transform_indices = @transform_0, window_bounds = array<i64: 8, 128>}, {transform_indices = @transform_1, window_bounds = array<i64: 8, 128>}, {transform_indices = @transform_2, window_bounds = array<i64: 8, 4>}, {transform_indices = @transform_3, window_bounds = array<i64: 8, 128>}]} {
    %c0 = arith.constant 0 : index
    %c0_0 = arith.constant 0 : index
    %0 = vector.load %arg2[%c0, %c0_0] : memref<8x128xf32, #tpu.memory_space<vmem>>, vector<8x128xf32>
    %c0_1 = arith.constant 0 : index
    %c0_2 = arith.constant 0 : index
    %1 = vector.load %arg1[%c0_1, %c0_2] : memref<8x128xf32, #tpu.memory_space<vmem>>, vector<8x128xf32>
    %2 = arith.subf %0, %1 : vector<8x128xf32>
    %3 = arith.mulf %2, %2 : vector<8x128xf32>
    %4 = vector.extract_strided_slice %3 {offsets = [0, 0], sizes = [8, 32], strides = [1, 1]} : vector<8x128xf32> to vector<8x32xf32>
    %cst = arith.constant dense<0.000000e+00> : vector<8xf32>
    %5 = vector.multi_reduction <add>, %4, %cst [1] : vector<8x32xf32> to vector<8xf32>
    %6 = vector.shape_cast %5 : vector<8xf32> to vector<8x1xf32>
    %7 = vector.extract_strided_slice %3 {offsets = [0, 32], sizes = [8, 32], strides = [1, 1]} : vector<8x128xf32> to vector<8x32xf32>
    %cst_3 = arith.constant dense<0.000000e+00> : vector<8xf32>
    %8 = vector.multi_reduction <add>, %7, %cst_3 [1] : vector<8x32xf32> to vector<8xf32>
    %9 = vector.shape_cast %8 : vector<8xf32> to vector<8x1xf32>
    %10 = vector.extract_strided_slice %3 {offsets = [0, 64], sizes = [8, 32], strides = [1, 1]} : vector<8x128xf32> to vector<8x32xf32>
    %cst_4 = arith.constant dense<0.000000e+00> : vector<8xf32>
    %11 = vector.multi_reduction <add>, %10, %cst_4 [1] : vector<8x32xf32> to vector<8xf32>
    %12 = vector.shape_cast %11 : vector<8xf32> to vector<8x1xf32>
    %13 = vector.extract_strided_slice %3 {offsets = [0, 96], sizes = [8, 32], strides = [1, 1]} : vector<8x128xf32> to vector<8x32xf32>
    %cst_5 = arith.constant dense<0.000000e+00> : vector<8xf32>
    %14 = vector.multi_reduction <add>, %13, %cst_5 [1] : vector<8x32xf32> to vector<8xf32>
    %15 = vector.shape_cast %14 : vector<8xf32> to vector<8x1xf32>
    %16 = tpu.concatenate %6, %9, %12, %15 in 1 : vector<8x1xf32>, vector<8x1xf32>, vector<8x1xf32>, vector<8x1xf32> -> vector<8x4xf32>
    %c0_6 = arith.constant 0 : index
    %c0_7 = arith.constant 0 : index
    %17 = vector.load %arg3[%c0_6, %c0_7] : memref<8x4xf32, #tpu.memory_space<vmem>>, vector<8x4xf32>
    %cst_8 = arith.constant 9.99999971E-10 : f32
    %18 = vector.broadcast %cst_8 : f32 to vector<8x4xf32>
    %19 = arith.addf %16, %18 : vector<8x4xf32>
    %20 = math.sqrt %19 : vector<8x4xf32>
    %cst_9 = arith.constant 1.000000e+00 : f32
    %21 = vector.broadcast %cst_9 : f32 to vector<8x4xf32>
    %22 = arith.subf %21, %20 : vector<8x4xf32>
    %cst_10 = arith.constant 0.000000e+00 : f32
    %23 = vector.broadcast %cst_10 : f32 to vector<8x4xf32>
    %24 = arith.maximumf %22, %23 : vector<8x4xf32>
    %25 = arith.mulf %17, %16 : vector<8x4xf32>
    %cst_11 = arith.constant 1.000000e+00 : f32
    %26 = vector.broadcast %cst_11 : f32 to vector<8x4xf32>
    %27 = arith.subf %26, %17 : vector<8x4xf32>
    %28 = arith.mulf %27, %24 : vector<8x4xf32>
    %29 = arith.mulf %28, %24 : vector<8x4xf32>
    %30 = arith.addf %25, %29 : vector<8x4xf32>
    %cst_12 = arith.constant 5.000000e-01 : f32
    %31 = vector.broadcast %cst_12 : f32 to vector<8x4xf32>
    %32 = arith.mulf %31, %30 : vector<8x4xf32>
    %33 = tpu.iota {dimensions = array<i32: 0>} : vector<8x4xi32>
    %c8_i32 = arith.constant 8 : i32
    %34 = arith.muli %arg0, %c8_i32 : i32
    %35 = vector.broadcast %34 : i32 to vector<8x4xi32>
    %36 = arith.addi %33, %35 : vector<8x4xi32>
    %c2_i32 = arith.constant 2 : i32
    %37 = vector.broadcast %c2_i32 : i32 to vector<8x4xi32>
    %38 = arith.cmpi slt, %36, %37 : vector<8x4xi32>
    %cst_13 = arith.constant 0.000000e+00 : f32
    %39 = vector.broadcast %cst_13 : f32 to vector<8x4xf32>
    %40 = arith.select %38, %32, %39 : vector<8x4xi1>, vector<8x4xf32>
    %41 = vector.shape_cast %40 : vector<8x4xf32> to vector<1x8x4xf32>
    %cst_14 = arith.constant dense<0.000000e+00> : vector<1xf32>
    %42 = vector.multi_reduction <add>, %41, %cst_14 [1, 2] : vector<1x8x4xf32> to vector<1xf32>
    %43 = vector.shape_cast %42 : vector<1xf32> to vector<1x1x1xf32>
    %44 = vector.extract %43[0, 0, 0] : f32 from vector<1x1x1xf32>
    %45 = vector.broadcast %44 : f32 to vector<1x1xf32>
    %46 = vector.shape_cast %45 : vector<1x1xf32> to vector<1x1xf32>
    %47 = vector.broadcast %46 : vector<1x1xf32> to vector<8x128xf32>
    %c0_15 = arith.constant 0 : index
    %c0_16 = arith.constant 0 : index
    %48 = vector.load %arg4[%c0_15, %c0_16] : memref<8x128xf32, #tpu.memory_space<vmem>>, vector<8x128xf32>
    tpu.vector_store %arg4[%c0_15, %c0_16], %47 {strides = array<i32>} : memref<8x128xf32, #tpu.memory_space<vmem>>, vector<8x128xf32>,
    return
  }
  func.func @transform_0(%arg0: i32) -> (i32, i32) {
    %c0_i32 = arith.constant 0 : i32
    %c0_i32_0 = arith.constant 0 : i32
    return %arg0, %c0_i32 : i32, i32
  }
  func.func @transform_1(%arg0: i32) -> (i32, i32) {
    %c0_i32 = arith.constant 0 : i32
    %c0_i32_0 = arith.constant 0 : i32
    return %arg0, %c0_i32 : i32, i32
  }
  func.func @transform_2(%arg0: i32) -> (i32, i32) {
    %c0_i32 = arith.constant 0 : i32
    %c0_i32_0 = arith.constant 0 : i32
    return %arg0, %c0_i32 : i32, i32
  }
  func.func @transform_3(%arg0: i32) -> (i32, i32) {
    %c0_i32 = arith.constant 0 : i32
    %c0_i32_0 = arith.constant 0 : i32
    return %arg0, %c0_i32 : i32, i32
  }
}

</mosaic_0001>

<bundles_post_ra>
// kernel: tpu_custom_call.1
= control target key start
LH: loop header
LB: loop body
LE: loop exit
PB: predicated region body
PF: predicated region fallthrough
CT: control target
= control target key end

     0   :  { %8 = vsyncpa [#allocation3], 0  ;;  %s228_s0 = inlined_call_operand.hbm [shape: f32[2,128], index: 0, kind: input, shape index: {}]   ;;  %s229_s1 = inlined_call_operand.vmem [shape: f32[2,128], index: 1, kind: input, shape index: {}]   ;;  %s230_s2 = inlined_call_operand.vmem [shape: f32[2,4], index: 2, kind: input, shape index: {}]   ;;  %s231_s3 = inlined_call_operand.hbm [shape: f32[8,128], index: 3, kind: output, shape index: {}]  }
   0x1   :  { %9 = vsyncpa [#allocation4], 0 }
   0x2   :  { %14 = vsyncadd [#allocation3], 96  ;;  %s172_s12 = smov [#allocation2]   ;;  %s124_s16 = scalar_lea.hbm %s228_s0, 32 }
   0x3   :  { %s15_s13 = sshll.u32 %s172_s12, 4  ;;  %p125_p0 = scmp.ne.s32.totalorder %s228_s0, %s124_s16  ;;  %s16_s13 = int_to_ptr.vmem [resolvable:$true] %s15_s13 }
   0x4   :  { %p128_p1 = scmp.lt.u32.totalorder %s124_s16, %s228_s0 }
   0x6   :  { %p130_p2 = pnand %p128_p1, %p125_p0 }
   0x8   :  { %133 = shalt.err (!%p130_p2)
}
   0x9   :  { %s134_s21 = scalar_lea.vmem %s16_s13, 32  ;;  %s138_s22 = scalar_lea.vmem %s16_s13, 128 }
   0xa   :  { %p135_p3 = scmp.ne.s32.totalorder %s16_s13, %s134_s21  ;;  %p139_p4 = scmp.lt.s32.totalorder %s16_s13, %s16_s13 }
   0xb   :  { %p140_p5 = scmp.lt.s32.totalorder %s138_s22, %s134_s21 }
   0xd   :  { %p141_p6 = por %p140_p5, %p139_p4 }
   0xf   :  { %p142_p7 = pnand %p141_p6, %p135_p3 }
  0x11   :  { %145 = shalt.err (!%p142_p7)
}
  0x12   :  { %s173_s23 = smov 32   ;;  %s174_s24 = smov 2  }
  0x13   :  { %21 = dma.hbm_to_vmem [thread:$0]  %s228_s0, 32, %s16_s13, [#allocation3], %s173_s23, %s173_s23, %s174_s24  }
  0x14   :  { %168 = dma.done.wait [#allocation3], 128  }
  0x15   :  { %169 = vsyncadd [#allocation3], 4294967168  ;;  %v29_v0 = vld [vmem:[%s229_s1] sm:$0xff]  ;;  %s175_s29 = smov 96   ;;  %s176_s30 = smov 64   ;;  %vm33_vm0 = vcmask 261120   ;;  %v79_v27 = vlaneseq }
  0x16   :  { %v30_v1 = vld [vmem:[#allocation2] sm:$0xff]  ;;  %vm56_vm1 = vcmask 7168   ;;  %vm58_vm2 = vcmask 15360   ;;  %vm60_vm3 = vcmask 23552   ;;  %vm86_vm7 = vcmask 31744  }
  0x17   :  { %v31_v2 = vsub.f32 %v29_v0, %v30_v1  ;;  %v62_v23 = vld [vmem:[%s230_s2] sm:$0xff]  ;;  %v80_v30 = vshrl.u32 %v79_v27, 7  ;;  %s177_s2 = smov [#allocation5]  }
  0x18   :  { %v74_v25 = vsub.f32 1.0, %v62_v23  ;;  %s105_s4 = sshll.u32 %s177_s2, 4  ;;  %s106_s4 = int_to_ptr.vmem [resolvable:$true] %s105_s4 }
  0x19   :  { %v32_v3 = vmul.f32 %v31_v2, %v31_v2  ;;  %vm84_vm6 = vcmp.lt.s32.totalorder %v80_v30, 2  ;;  %s146_s6 = scalar_lea.vmem %s106_s4, 128  ;;  %p151_p9 = scmp.lt.s32.totalorder %s106_s4, %s106_s4 }
  0x1a   :  { %p147_p8 = scmp.ne.s32.totalorder %s106_s4, %s146_s6  ;;  %p152_p10 = scmp.lt.s32.totalorder %s146_s6, %s146_s6 }
  0x1b   :  { %38 = vrot.lane.b32.xlu0 %v32_v3, %s175_s29  ;;  %50 = vrot.lane.b32.xlu1 %v32_v3, %s173_s23  ;;  %v34_v4 = vsel %vm33_vm0, %v32_v3, 0.0 }
  0x1c   :  { %p153_p11 = por %p152_p10, %p151_p9 }
  0x1e   :  { %p154_p12 = pnand %p153_p11, %p147_p8 }
  0x1f   :  { %44 = vrot.lane.b32.xlu0 %v32_v3, %s176_s30 }
  0x3f   :  { %35 = vadd.xlane.f32.xlu1 %v34_v4 }
  0x8d   :  { %v39_v5 = vpop.permute.xlu0 %38  ;;  %v51_v6 = vpop.permute.xlu1 %50 }
  0x8e   :  { %v41_v7 = vsel %vm33_vm0, %v39_v5, 0.0  ;;  %v53_v8 = vsel %vm33_vm0, %v51_v6, 0.0 }
  0x8f   :  { %42 = vadd.xlane.f32.xlu0 %v41_v7  ;;  %54 = vadd.xlane.f32.xlu1 %v53_v8 }
  0x91   :  { %v45_v9 = vpop.permute.xlu0 %44 }
  0x92   :  { %v47_v10 = vsel %vm33_vm0, %v45_v9, 0.0 }
  0x93   :  { %48 = vadd.xlane.f32.xlu0 %v47_v10 }
  0xcc   :  { %v36_v11 = vpop.xlane.xlu1 %35 }
 0x11c   :  { %v43_v12 = vpop.xlane.xlu0 %42  ;;  %v55_v13 = vpop.xlane.xlu1 %54 }
 0x11d   :  { %v57_v14 = vsel %vm56_vm1, %v36_v11, %v43_v12 }
 0x120   :  { %v49_v15 = vpop.xlane.xlu0 %48 }
 0x121   :  { %v59_v16 = vsel %vm58_vm2, %v57_v14, %v49_v15 }
 0x122   :  { %v61_v17 = vsel %vm60_vm3, %v59_v16, %v55_v13 }
 0x123   :  { %v63_v18 = vadd.f32 1e-09, %v61_v17  ;;  %v73_v31 = vmul.f32 %v62_v23, %v61_v17 }
 0x125   :  { %122 = vrsqrt.f32 %v63_v18  ;;  %vm66_vm4 = vcmp.eq.f32.partialorder %v63_v18, inf  ;;  %v69_v21 = vand.u32 2147483648, %v63_v18  ;;  %vm68_vm5 = vcmp.eq.f32.partialorder %v63_v18, 0.0 }
 0x12f   :  { %v123_v19 = vpop.eup %122 }
 0x130   :  { %v65_v20 = vmul.f32 %v123_v19, %v63_v18 }
 0x132   :  { %v67_v22 = vsel %vm66_vm4, %v63_v18, %v65_v20 }
 0x133   :  { %v70_v24 = vsel %vm68_vm5, %v69_v21, %v67_v22 }
 0x134   :  { %v71_v26 = vsub.f32 1.0, %v70_v24 }
 0x136   :  { %v72_v28 = vmax.f32 %v71_v26, 0.0 }
 0x138   :  { %v75_v29 = vmul.f32 %v74_v25, %v72_v28 }
 0x13a   :  { %v76_v32 = vmul.f32 %v75_v29, %v72_v28 }
 0x13c   :  { %v77_v33 = vadd.f32 %v76_v32, %v73_v31 }
 0x13e   :  { %v78_v34 = vmul.f32 0.5, %v77_v33 }
 0x140   :  { %v85_v35 = vsel %vm84_vm6, %v78_v34, 0.0 }
 0x141   :  { %v87_v36 = vsel %vm86_vm7, %v85_v35, 0.0 }
 0x142   :  { %88 = vadd.xlane.f32.xlu0 %v87_v36 }
 0x1cf   :  { %v89_v37 = vpop.xlane.xlu0 %88 }
 0x1d0   :  { %v90_v38 = vrot.slane %v89_v37, 4 }
 0x1d2   :  { %v91_v39 = vadd.f32 %v90_v38, %v89_v37 }
 0x1d4   :  { %v92_v40 = vrot.slane %v91_v39, 2 }
 0x1d6   :  { %v93_v41 = vadd.f32 %v92_v40, %v91_v39 }
 0x1d8   :  { %v94_v42 = vrot.slane %v93_v41, 1 }
 0x1da   :  { %v95_v43 = vadd.f32 %v94_v42, %v93_v41 }
 0x1dc   :  { %114 = vpush %v95_v43 }
 0x20d   :  { %s115_s5 = spop %114 }
 0x20e   :  { %v97_v44 = vstv %s115_s5 }
 0x20f   :  { %98 = vst [vmem:[#allocation5] sm:$0xff] %v97_v44 }
 0x210   :  { %157 = shalt.err (!%p154_p12)
}
 0x211   :  { %s158_s9 = scalar_lea.hbm %s231_s3, 128 }
 0x212   :  { %p159_p13 = scmp.ne.s32.totalorder %s231_s3, %s158_s9  ;;  %p162_p0 = scmp.lt.u32.totalorder %s158_s9, %s231_s3 }
 0x214   :  { %p164_p1 = pnand %p162_p0, %p159_p13 }
 0x216   :  { %167 = shalt.err (!%p164_p1)
}
 0x217   :  { %108 = dma.vmem_to_hbm [thread:$0]  %s106_s4, 128, %s231_s3, [#allocation4]  }
 0x218   :  { %170 = dma.done.wait [#allocation4], 128  }
 0x219   :  { %171 = vsyncadd [#allocation4], 4294967168 }
 0x21a   :  { %112 = vsyncpa [#allocation3], 1 }
 0x21b   :  { %113 = vsyncpa [#allocation4], 1 }

</bundles_post_ra>
